<compile_context>
chip_gen: v7x
topology: tpu7x:2x2x1
jax: 0.10.0
libtpu: 0.0.40
codegen_flags: <defaults>
</compile_context>

<pallas_src>
import functools

import jax
import jax.numpy as jnp
from jax.experimental import pallas as pl
from jax.experimental.pallas import tpu as pltpu


def _deconv1d_kernel(x_ref, w_ref, b_ref, o_ref, acc_ref, *, dilation, c_out, relu):
    """One batch tile of a stride-2 dilated ConvTranspose1d.

    x_ref   : (Nb, L_in, C_in)      bf16 input tile (NLC)
    w_ref   : (C_in, K*C_out)       bf16 fused-tap weight (already weight-normed)
    b_ref   : (1, 2*C_out)          f32 bias, duplicated for even|odd phase lanes
    o_ref   : (Nb, Lh, 2*C_out)     f32 output (even phase lanes 0:C, odd C:2C)
    acc_ref : (Nb, Lh, 2*C_out)     f32 VMEM scratch accumulator
    """
    nb, l_in, c_in = x_ref.shape
    kc = w_ref.shape[1]
    k_taps = kc // c_out

    # Bias comes for free at accumulator init (every output position gets it).
    acc_ref[...] = jnp.broadcast_to(b_ref[...], acc_ref.shape)

    # One fused MXU matmul over all taps: (Nb*L_in, C_in) @ (C_in, K*C_out),
    # bf16 operands, f32 accumulation.
    x2 = x_ref[...].reshape(nb * l_in, c_in)
    z = jnp.dot(x2, w_ref[...], preferred_element_type=jnp.float32)
    z = z.reshape(nb, l_in, kc)

    # Scatter each tap into its (parity, shift) slot via slice-accumulation.
    # y[t] = sum_{k,l : t = 2*l + k*d} x[l] @ w[k]; with t = 2*m + p this is
    # m = l + (k*d)//2 and p = (k*d) % 2  (all offsets are static).
    for k in range(k_taps):
        kd = k * dilation
        p = kd % 2
        s = kd // 2
        acc_ref[:, s:s + l_in, p * c_out:(p + 1) * c_out] += (
            z[:, :, k * c_out:(k + 1) * c_out])

    y = acc_ref[...]
    if relu:
        y = jnp.maximum(y, 0.0)
    o_ref[...] = y.astype(o_ref.dtype)


def _pick_block_n(n, cap=8):
    """Largest divisor of n (<= cap) that still leaves >= 2 grid steps, so the
    fixed per-step cost is amortized while keeping >= 2 parallel steps for the
    two TensorCores on v7x."""
    best = 1
    for b in range(1, min(n, cap) + 1):
        if n % b == 0 and (n // b >= 2 or n == 1):
            best = b
    return best


def d_forward(x_ncl, v, g, bias, *, dilation, nonlinearity="linear", block_n=None):
    """Forward pass of module D (eval mode).

    x_ncl : (N, C_in, L_in) float32   (PyTorch NCL layout)
    v     : (C_in, C_out, K)          weight_norm direction (torch weight layout)
    g     : (C_in, 1, 1)              weight_norm magnitude
    bias  : (C_out,)
    returns (N, C_out, L_out), L_out = 2*(L_in-1) + dilation*(K-1) + 1
    """
    x_ncl = x_ncl.astype(jnp.float32)
    v = v.astype(jnp.float32)
    g = g.astype(jnp.float32)
    bias = bias.astype(jnp.float32)

    # weight_norm (dim=0 default for ConvTranspose1d weight (C_in, C_out, K)).
    # Keep the normalization in f32; only the matmul operands get cast to bf16.
    v_norm = jnp.sqrt(jnp.sum(v * v, axis=(1, 2), keepdims=True))
    w = g * v / v_norm                                    # (C_in, C_out, K) f32

    C_in, C_out, K = w.shape
    N, _, L_in = x_ncl.shape
    L_out = 2 * (L_in - 1) + dilation * (K - 1) + 1
    max_shift = ((K - 1) * dilation) // 2
    Lh = L_in + max_shift                                 # per-phase length
    # Guards: slice-accumulation stays in bounds, interleaved buffer covers L_out.
    assert max_shift + L_in <= Lh
    assert 2 * Lh >= L_out

    # Fused tap weight (C_in, K*C_out); column block k == tap k.
    w2 = jnp.transpose(w, (0, 2, 1)).reshape(C_in, K * C_out).astype(jnp.bfloat16)
    x_nlc = jnp.transpose(x_ncl, (0, 2, 1)).astype(jnp.bfloat16)   # (N, L_in, C_in)
    b2 = jnp.concatenate([bias, bias]).reshape(1, 2 * C_out)       # even|odd lanes

    if block_n is None:
        block_n = _pick_block_n(N)
    assert N % block_n == 0
    grid_n = N // block_n

    kernel = functools.partial(
        _deconv1d_kernel, dilation=dilation, c_out=C_out,
        relu=(nonlinearity == "relu"))

    out = pl.pallas_call(
        kernel,
        out_shape=jax.ShapeDtypeStruct((N, Lh, 2 * C_out), jnp.float32),
        grid=(grid_n,),
        in_specs=[
            pl.BlockSpec((block_n, L_in, C_in), lambda n: (n, 0, 0)),
            pl.BlockSpec((C_in, K * C_out), lambda n: (0, 0)),
            pl.BlockSpec((1, 2 * C_out), lambda n: (0, 0)),
        ],
        out_specs=pl.BlockSpec((block_n, Lh, 2 * C_out), lambda n: (n, 0, 0)),
        scratch_shapes=[pltpu.VMEM((block_n, Lh, 2 * C_out), jnp.float32)],
        compiler_params=pltpu.CompilerParams(dimension_semantics=("parallel",)),
    )(x_nlc, w2, b2)

    # Interleave even/odd phases with a ZERO-COPY reshape (no transpose pass),
    # trim to L_out, then a single boundary transpose back to PyTorch NCL.
    y = out.reshape(N, 2 * Lh, C_out)[:, :L_out, :]
    y = jnp.transpose(y, (0, 2, 1))                       # (N, C_out, L_out)

    # dropout: eval mode -> identity.
    return y


def _reference(x_ncl, w_eff, bias, dilation, relu=False):
    """Plain-JAX reference: ConvTranspose1d(stride=2, dilation) given the
    effective (already weight-normalized) weight."""
    N, C_in, L_in = x_ncl.shape
    _, C_out, K = w_eff.shape
    L_out = 2 * (L_in - 1) + dilation * (K - 1) + 1
    y = jnp.zeros((N, C_out, L_out), jnp.float32)
    for k in range(K):
        contrib = jnp.einsum("ncl,co->nol", x_ncl, w_eff[:, :, k],
                             precision=jax.lax.Precision.HIGHEST)
        start = k * dilation
        y = y.at[:, :, start:start + 2 * L_in - 1:2].add(contrib)
    y = y + bias[None, :, None]
    return jnp.maximum(y, 0.0) if relu else y


if __name__ == "__main__":
    # Small deterministic setup consistent with D(in_channels=4, out_channels=8,
    # kernel_size=3, dilation=d).
    N, C_in, C_out, K, L_in = 4, 4, 8, 3, 16

    key = jax.random.PRNGKey(0)
    kx, kv, kb = jax.random.split(key, 3)
    x = jax.random.normal(kx, (N, C_in, L_in), jnp.float32)
    v = jax.random.normal(kv, (C_in, C_out, K), jnp.float32) * 0.1
    # weight_norm init: g = ||v|| over dims (1,2)  (so effective weight == v)
    g = jnp.sqrt(jnp.sum(v * v, axis=(1, 2), keepdims=True))
    bias = jax.random.normal(kb, (C_out,), jnp.float32) * 0.01

    # Effective weight-normalized weight, plus bf16-rounded operands for the
    # tight check (the kernel feeds the MXU in bf16, accumulates in f32).
    v_norm = jnp.sqrt(jnp.sum(v * v, axis=(1, 2), keepdims=True))
    w_eff = g * v / v_norm
    w_bf = w_eff.astype(jnp.bfloat16).astype(jnp.float32)
    x_bf = x.astype(jnp.bfloat16).astype(jnp.float32)

    for dilation, nonlin in ((2, "linear"), (3, "relu")):
        y = d_forward(x, v, g, bias, dilation=dilation, nonlinearity=nonlin)
        y = jax.block_until_ready(y)

        relu = nonlin == "relu"
        y_ref_bf = _reference(x_bf, w_bf, bias, dilation, relu=relu)   # tight
        y_ref_f32 = _reference(x, w_eff, bias, dilation, relu=relu)    # loose
        assert y.shape == y_ref_f32.shape, (y.shape, y_ref_f32.shape)
        assert jnp.allclose(y, y_ref_bf, atol=1e-4, rtol=1e-4), float(
            jnp.max(jnp.abs(y - y_ref_bf)))
        assert jnp.allclose(y, y_ref_f32, atol=5e-2, rtol=5e-2), float(
            jnp.max(jnp.abs(y - y_ref_f32)))

    print("KERNEL_OK")
</pallas_src>

<mosaic_0001>
module attributes {stable_mosaic.version = 11 : i64} {
  func.func @_deconv1d_kernel(%arg0: i32, %arg1: memref<2x16x4xbf16, #tpu.memory_space<vmem>>, %arg2: memref<4x24xbf16, #tpu.memory_space<vmem>>, %arg3: memref<1x16xf32, #tpu.memory_space<vmem>>, %arg4: memref<2x18x16xf32, #tpu.memory_space<vmem>>, %arg5: memref<2x18x16xf32, #tpu.memory_space<vmem>>) attributes {dimension_semantics = [#tpu.dimension_semantics<parallel>], iteration_bounds = array<i64: 2>, scalar_prefetch = 0 : i64, scratch_operands = 1 : i64, tpu.core_type = #tpu.core_type<tc>, window_params = [{transform_indices = @transform_0, window_bounds = array<i64: 2, 16, 4>}, {pipeline_mode = #tpu.pipeline_mode<synchronous>, transform_indices = @transform_1, window_bounds = array<i64: 4, 24>}, {pipeline_mode = #tpu.pipeline_mode<synchronous>, transform_indices = @transform_2, window_bounds = array<i64: 1, 16>}, {transform_indices = @transform_3, window_bounds = array<i64: 2, 18, 16>}]} {
    %c0 = arith.constant 0 : index
    %c0_0 = arith.constant 0 : index
    %0 = vector.load %arg3[%c0, %c0_0] : memref<1x16xf32, #tpu.memory_space<vmem>>, vector<1x16xf32>
    %1 = vector.shape_cast %0 : vector<1x16xf32> to vector<1x1x16xf32>
    %2 = vector.broadcast %1 : vector<1x1x16xf32> to vector<2x18x16xf32>
    %c0_1 = arith.constant 0 : index
    %c0_2 = arith.constant 0 : index
    %c0_3 = arith.constant 0 : index
    %3 = vector.load %arg5[%c0_1, %c0_2, %c0_3] : memref<2x18x16xf32, #tpu.memory_space<vmem>>, vector<2x18x16xf32>
    tpu.vector_store %arg5[%c0_1, %c0_2, %c0_3], %2 {strides = array<i32>} : memref<2x18x16xf32, #tpu.memory_space<vmem>>, vector<2x18x16xf32>,
    %c0_4 = arith.constant 0 : index
    %c0_5 = arith.constant 0 : index
    %c0_6 = arith.constant 0 : index
    %4 = vector.load %arg1[%c0_4, %c0_5, %c0_6] : memref<2x16x4xbf16, #tpu.memory_space<vmem>>, vector<2x16x4xbf16>
    %5 = vector.shape_cast %4 : vector<2x16x4xbf16> to vector<32x4xbf16>
    %c0_7 = arith.constant 0 : index
    %c0_8 = arith.constant 0 : index
    %6 = vector.load %arg2[%c0_7, %c0_8] : memref<4x24xbf16, #tpu.memory_space<vmem>>, vector<4x24xbf16>
    %cst = arith.constant dense<0.000000e+00> : vector<32x24xf32>
    %7 = tpu.matmul %5, %6, %cst {dimension_numbers = #tpu.dot_dimension_numbers<[1], [0], [0], [1], [0, 0, 1, 1], [], []>} : vector<32x4xbf16>, vector<4x24xbf16>, vector<32x24xf32> -> vector<32x24xf32>
    %8 = vector.shape_cast %7 : vector<32x24xf32> to vector<2x16x24xf32>
    %c0_9 = arith.constant 0 : index
    %c0_10 = arith.constant 0 : index
    %c0_11 = arith.constant 0 : index
    %9 = vector.load %arg5[%c0_9, %c0_10, %c0_11] : memref<2x18x16xf32, #tpu.memory_space<vmem>>, vector<2x16x8xf32>
    %10 = vector.extract_strided_slice %8 {offsets = [0, 0, 0], sizes = [2, 16, 8], strides = [1, 1, 1]} : vector<2x16x24xf32> to vector<2x16x8xf32>
    %11 = arith.addf %9, %10 : vector<2x16x8xf32>
    %c0_12 = arith.constant 0 : index
    %c0_13 = arith.constant 0 : index
    %c0_14 = arith.constant 0 : index
    %12 = vector.load %arg5[%c0_12, %c0_13, %c0_14] : memref<2x18x16xf32, #tpu.memory_space<vmem>>, vector<2x16x8xf32>
    tpu.vector_store %arg5[%c0_12, %c0_13, %c0_14], %11 {strides = array<i32>} : memref<2x18x16xf32, #tpu.memory_space<vmem>>, vector<2x16x8xf32>,
    %c0_15 = arith.constant 0 : index
    %c1 = arith.constant 1 : index
    %c0_16 = arith.constant 0 : index
    %13 = vector.load %arg5[%c0_15, %c1, %c0_16] : memref<2x18x16xf32, #tpu.memory_space<vmem>>, vector<2x16x8xf32>
    %14 = vector.extract_strided_slice %8 {offsets = [0, 0, 8], sizes = [2, 16, 8], strides = [1, 1, 1]} : vector<2x16x24xf32> to vector<2x16x8xf32>
    %15 = arith.addf %13, %14 : vector<2x16x8xf32>
    %c0_17 = arith.constant 0 : index
    %c1_18 = arith.constant 1 : index
    %c0_19 = arith.constant 0 : index
    %16 = vector.load %arg5[%c0_17, %c1_18, %c0_19] : memref<2x18x16xf32, #tpu.memory_space<vmem>>, vector<2x16x8xf32>
    tpu.vector_store %arg5[%c0_17, %c1_18, %c0_19], %15 {strides = array<i32>} : memref<2x18x16xf32, #tpu.memory_space<vmem>>, vector<2x16x8xf32>,
    %c0_20 = arith.constant 0 : index
    %c2 = arith.constant 2 : index
    %c0_21 = arith.constant 0 : index
    %17 = vector.load %arg5[%c0_20, %c2, %c0_21] : memref<2x18x16xf32, #tpu.memory_space<vmem>>, vector<2x16x8xf32>
    %18 = vector.extract_strided_slice %8 {offsets = [0, 0, 16], sizes = [2, 16, 8], strides = [1, 1, 1]} : vector<2x16x24xf32> to vector<2x16x8xf32>
    %19 = arith.addf %17, %18 : vector<2x16x8xf32>
    %c0_22 = arith.constant 0 : index
    %c2_23 = arith.constant 2 : index
    %c0_24 = arith.constant 0 : index
    %20 = vector.load %arg5[%c0_22, %c2_23, %c0_24] : memref<2x18x16xf32, #tpu.memory_space<vmem>>, vector<2x16x8xf32>
    tpu.vector_store %arg5[%c0_22, %c2_23, %c0_24], %19 {strides = array<i32>} : memref<2x18x16xf32, #tpu.memory_space<vmem>>, vector<2x16x8xf32>,
    %c0_25 = arith.constant 0 : index
    %c0_26 = arith.constant 0 : index
    %c0_27 = arith.constant 0 : index
    %21 = vector.load %arg5[%c0_25, %c0_26, %c0_27] : memref<2x18x16xf32, #tpu.memory_space<vmem>>, vector<2x18x16xf32>
    %c0_28 = arith.constant 0 : index
    %c0_29 = arith.constant 0 : index
    %c0_30 = arith.constant 0 : index
    %22 = vector.load %arg4[%c0_28, %c0_29, %c0_30] : memref<2x18x16xf32, #tpu.memory_space<vmem>>, vector<2x18x16xf32>
    tpu.vector_store %arg4[%c0_28, %c0_29, %c0_30], %21 {strides = array<i32>} : memref<2x18x16xf32, #tpu.memory_space<vmem>>, vector<2x18x16xf32>,
    return
  }
  func.func @transform_0(%arg0: i32) -> (i32, i32, i32) {
    %c0_i32 = arith.constant 0 : i32
    %c0_i32_0 = arith.constant 0 : i32
    %c0_i32_1 = arith.constant 0 : i32
    return %arg0, %c0_i32, %c0_i32_0 : i32, i32, i32
  }
  func.func @transform_1(%arg0: i32) -> (i32, i32) {
    %c0_i32 = arith.constant 0 : i32
    %c0_i32_0 = arith.constant 0 : i32
    %c0_i32_1 = arith.constant 0 : i32
    return %c0_i32, %c0_i32_0 : i32, i32
  }
  func.func @transform_2(%arg0: i32) -> (i32, i32) {
    %c0_i32 = arith.constant 0 : i32
    %c0_i32_0 = arith.constant 0 : i32
    %c0_i32_1 = arith.constant 0 : i32
    return %c0_i32, %c0_i32_0 : i32, i32
  }
  func.func @transform_3(%arg0: i32) -> (i32, i32, i32) {
    %c0_i32 = arith.constant 0 : i32
    %c0_i32_0 = arith.constant 0 : i32
    %c0_i32_1 = arith.constant 0 : i32
    return %arg0, %c0_i32, %c0_i32_0 : i32, i32, i32
  }
}

</mosaic_0001>

<bundles_post_ra>
// kernel: tpu_custom_call.1
= control target key start
LH: loop header
LB: loop body
LE: loop exit
PB: predicated region body
PF: predicated region fallthrough
CT: control target
= control target key end

     0   :  { %s476_s12 = smov 0   ;;  %s527_s0 = inlined_call_operand.vmem [shape: bf16[4,16,4], index: 0, kind: input, shape index: {}]   ;;  %s528_s1 = inlined_call_operand.vmem [shape: bf16[4,24], index: 1, kind: input, shape index: {}]   ;;  %s529_s2 = inlined_call_operand.vmem [shape: f32[1,16], index: 2, kind: input, shape index: {}]   ;;  %s530_s3 = inlined_call_operand.vmem [shape: f32[4,18,16], index: 3, kind: output, shape index: {}]  }
   0x1 LB: > { %s405_s13 = sadd.s32 4294967295, %s452_s12   ;;  %p409_p0 = scmp.ge.s32.totalorder %s452_s12, 1  ;;  %s452_s12 = sphi %s476_s12, %s13_s12  }
   0x2   : > { %p139_p1 = scmp.lt.s32.totalorder %s452_s12, 3 }
   0x4   : > { %p140_p2 = pnand %p409_p0, %p139_p1 }
   0x5   : > { %v199_v0 = vld [vmem:[%s528_s1] sm:$0x3] (!%p140_p2)  ;;  %vm217_vm0 = vcmask (!%p140_p2), 1041408   ;;  %s410_s16 = sshll.u32 (!%p140_p2), %s405_s13, 1  ;;  %vm187_vm1 = vcmask (!%p140_p2), 130048   ;;  %vm210_vm2 = vcmask (!%p140_p2), 31744  }
   0x6   : > { %143 = sbr.rel (%p140_p2) target bundleno = 373 (0x175), region = 32  ;;  %432 = vmatprep.subr.msk.bf16.mxu0 (!%p140_p2), %vm217_vm0, %v199_v0  ;;  %v219_v1 = vsel (!%p140_p2), %vm217_vm0, %v199_v0, 0  ;;  %p166_p3 = scmp.lt.s32.totalorder (!%p140_p2), %s410_s16, 3  ;;  %v415_v2 = vld [vmem:[%s529_s2] ss:$0 sm:$0xff] (!%p140_p2)  ;;  %vm190_vm3 = vcmask (!%p140_p2), 123904  }
   0x7   : > { %427 = vmatpush3.bf16.msra.mxu0 (!%p140_p2), %v219_v1  ;;  %192 = vst.msk [vmem:[#allocation2 + $0x18] sm:$0xff] (!%p140_p2), %vm187_vm1, %v415_v2  ;;  %188 = vst.msk [vmem:[#allocation2] sm:$0xff] (!%p140_p2), %vm187_vm1, %v415_v2  ;;  %vm278_vm4 = vcmask (!%p140_p2), 64512   ;;  %s454_s23 = smov (!%p140_p2), 120   ;;  %s455_s24 = smov (!%p140_p2), 112  }
   0x8   : > { %189 = vst.msk [vmem:[#allocation2 + $0x8] sm:$0xff] (!%p140_p2), %vm187_vm1, %v415_v2  ;;  %193 = vst.msk [vmem:[#allocation2 + $0x20] sm:$0xff] (!%p140_p2), %vm187_vm1, %v415_v2 }
   0x9   : > { %194 = vst.msk [vmem:[#allocation2 + $0x28] sm:$0x3] (!%p140_p2), %vm190_vm3, %v415_v2  ;;  %191 = vst.msk [vmem:[#allocation2 + $0x10] sm:$0x3] (!%p140_p2), %vm190_vm3, %v415_v2 }
   0xd   : > { %s532_s16 = smov (!%p166_p3, %s410_s16), 3 }
   0xe   : > { %s422_s19 = sshll.u32 %s532_s16, 3  ;;  %v272_v5 = vld [vmem:[#allocation2 + $0x18] sm:$0xff]  ;;  %v270_v6 = vld [vmem:[#allocation2] sm:$0xff]  ;;  %s433_s25 = smul.u32 24, %s532_s16 }
   0xf   : > { %s170_s22 = scalar_lea.vmem %s527_s0, %s422_s19  ;;  %v273_v8 = vld [vmem:[#allocation2 + $0x20] sm:$0xff]  ;;  %v271_v11 = vld [vmem:[#allocation2 + $0x8] sm:$0xff] }
  0x10   : > { %v444_v3 = vld [vmem:[%s170_s22] sm:$0xff]   ;;  %v445_v4 = vld [vmem:[%s170_s22 + $0x8] sm:$0xff]   ;;  %s177_s28 = scalar_lea.vmem %s530_s3, %s433_s25 }
  0x11   : > { %428 = vmatprep.mubr.msk.bf16.mxu0 %vm210_vm2, %v444_v3 }
  0x12   : > { %429 = vmatmul.mubr.msk.bf16.vlgmr.msra.gmra.mrb[0].mxu0 %vm210_vm2, %v445_v4 }
  0xe5   : > { %v430_v7 = vpop.f32.mrb[0].mxu0 }
  0xe6   : > { %v276_v9 = vadd.f32 %v430_v7, %v272_v5  ;;  %295 = vrot.lane.b32.xlu1 %v430_v7, %s454_s23  ;;  %v255_v10 = vpop.f32.mrb[1].mxu0 }
  0xe7   : > { %v274_v12 = vadd.f32 %v270_v6, %v255_v10  ;;  %291 = vrot.lane.b32.xlu0 %v255_v10, %s454_s23  ;;  %v431_v13 = vpop.f32.mrb[2].mxu0 }
  0xe8   : > { %281 = vst.msk [vmem:[#allocation2 + $0x18] sm:$0xff] %vm278_vm4, %v276_v9  ;;  %v277_v14 = vadd.f32 %v431_v13, %v273_v8  ;;  %v258_v15 = vpop.f32.mrb[3].mxu0 }
  0xe9   : > { %279 = vst.msk [vmem:[#allocation2] sm:$0xff] %vm278_vm4, %v274_v12  ;;  %v275_v16 = vadd.f32 %v271_v11, %v258_v15 }
  0xea   : > { %282 = vst.msk [vmem:[#allocation2 + $0x20] sm:$0xff] %vm278_vm4, %v277_v14  ;;  %297 = vrot.lane.b32.xlu1 %v431_v13, %s454_s23 }
  0xeb   : > { %280 = vst.msk [vmem:[#allocation2 + $0x8] sm:$0xff] %vm278_vm4, %v275_v16  ;;  %293 = vrot.lane.b32.xlu0 %v258_v15, %s454_s23 }
  0xee   : > { %317 = vrot.lane.b32.xlu1 %v258_v15, %s455_s24 }
  0xef   : > { %315 = vrot.lane.b32.xlu0 %v255_v10, %s455_s24 }
  0xf1   : > { %v285_v18 = vld [vmem:[#allocation2 + $0x19] sm:$0xff]  ;;  %v286_v24 = vld [vmem:[#allocation2 + $0x21] sm:$0xff] }
  0xf2   : > { %321 = vrot.lane.b32.xlu1 %v431_v13, %s455_s24  ;;  %v283_v21 = vld [vmem:[#allocation2 + $0x1] sm:$0xff]  ;;  %v284_v27 = vld [vmem:[#allocation2 + $0x9] sm:$0xff] }
  0xf3   : > { %319 = vrot.lane.b32.xlu0 %v430_v7, %s455_s24 }
 0x158   : > { %v296_v17 = vpop.permute.xlu1 %295 }
 0x159   : > { %v305_v19 = vadd.f32 %v296_v17, %v285_v18  ;;  %v292_v20 = vpop.permute.xlu0 %291 }
 0x15a   : > { %v303_v22 = vadd.f32 %v292_v20, %v283_v21 }
 0x15b   : > { %309 = vst.msk [vmem:[#allocation2 + $0x19] sm:$0xff] %vm278_vm4, %v305_v19 }
 0x15c   : > { %307 = vst.msk [vmem:[#allocation2 + $0x1] sm:$0xff] %vm278_vm4, %v303_v22  ;;  %v298_v23 = vpop.permute.xlu1 %297 }
 0x15d   : > { %v306_v25 = vadd.f32 %v298_v23, %v286_v24  ;;  %v294_v26 = vpop.permute.xlu0 %293 }
 0x15e   : > { %v304_v28 = vadd.f32 %v294_v26, %v284_v27 }
 0x15f   : > { %310 = vst.msk [vmem:[#allocation2 + $0x21] sm:$0xff] %vm278_vm4, %v306_v25 }
 0x160   : > { %308 = vst.msk [vmem:[#allocation2 + $0x9] sm:$0xff] %vm278_vm4, %v304_v28  ;;  %v318_v29 = vpop.permute.xlu1 %317 }
 0x161   : > { %v316_v30 = vpop.permute.xlu0 %315 }
 0x164   : > { %v322_v33 = vpop.permute.xlu1 %321 }
 0x165   : > { %v320_v31 = vpop.permute.xlu0 %319 }
 0x166   : > { %v314_v32 = vld [vmem:[#allocation2 + $0x22] sm:$0xff]  ;;  %v313_v34 = vld [vmem:[#allocation2 + $0x1a] sm:$0xff] }
 0x167   : > { %v312_v35 = vld [vmem:[#allocation2 + $0xa] sm:$0xff]  ;;  %v311_v36 = vld [vmem:[#allocation2 + $0x2] sm:$0xff]  ;;  %v330_v37 = vadd.f32 %v322_v33, %v314_v32  ;;  %v329_v38 = vadd.f32 %v320_v31, %v313_v34 }
 0x168   : > { %v328_v39 = vadd.f32 %v318_v29, %v312_v35  ;;  %v327_v40 = vadd.f32 %v316_v30, %v311_v36 }
 0x169   : > { %334 = vst.msk [vmem:[#allocation2 + $0x22] sm:$0xff] %vm278_vm4, %v330_v37  ;;  %333 = vst.msk [vmem:[#allocation2 + $0x1a] sm:$0xff] %vm278_vm4, %v329_v38 }
 0x16a   : > { %332 = vst.msk [vmem:[#allocation2 + $0xa] sm:$0xff] %vm278_vm4, %v328_v39  ;;  %331 = vst.msk [vmem:[#allocation2 + $0x2] sm:$0xff] %vm278_vm4, %v327_v40 }
 0x170   : > { %v340_v44 = vld [vmem:[#allocation2 + $0x28] sm:$0x3]  ;;  %v338_v45 = vld [vmem:[#allocation2 + $0x18] sm:$0xff]  ;;  %v339_v46 = vld [vmem:[#allocation2 + $0x20] sm:$0xff] }
 0x171   : > { %v337_v41 = vld [vmem:[#allocation2 + $0x10] sm:$0x3]  ;;  %v335_v42 = vld [vmem:[#allocation2] sm:$0xff]  ;;  %v336_v43 = vld [vmem:[#allocation2 + $0x8] sm:$0xff]  ;;  %346 = vst.msk [vmem:[%s177_s28 + $0x28] sm:$0x3] %vm190_vm3, %v340_v44 }
 0x172   : > { %343 = vst.msk [vmem:[%s177_s28 + $0x10] sm:$0x3] %vm190_vm3, %v337_v41 }
 0x173   : > { %341 = vst.msk [vmem:[%s177_s28] sm:$0xff] %vm187_vm1, %v335_v42  ;;  %342 = vst.msk [vmem:[%s177_s28 + $0x8] sm:$0xff] %vm187_vm1, %v336_v43 }
 0x174   : > { %344 = vst.msk [vmem:[%s177_s28 + $0x18] sm:$0xff] %vm187_vm1, %v338_v45  ;;  %345 = vst.msk [vmem:[%s177_s28 + $0x20] sm:$0xff] %vm187_vm1, %v339_v46 }
 0x175 PF: > { %s13_s12 = sadd.s32 1, %s452_s12  }
 0x176   : > { %p10_p4 = scmp.ge.s32.totalorder %s13_s12, 4  }
 0x178   :  { %12 = sbr.rel (!%p10_p4) target bundleno = 1 (0x1), region = 62 }

</bundles_post_ra>
